<compile_context>
chip_gen: v5e
topology: v5e:2x2
jax: 0.10.0
libtpu: 0.0.40
codegen_flags: <defaults>
</compile_context>

<pallas_src>
import math
import functools

import jax
import jax.numpy as jnp
from jax.experimental import pallas as pl
from jax.experimental.pallas import tpu as pltpu


def _time_embedding_kernel(t_ref, trig_ref, w1_ref, b1_ref, w2_ref, b2_ref, out_ref):
    # t_ref    : (TB, 1)       f32   -- timesteps for this row-tile
    # trig_ref : (2, C//4)     f32   -- row 0: duplicated freqs, row 1: phase (0 / pi/2)
    # w1_ref   : (C//4, C)     bf16  -- lin1 weight (stored as PyTorch weight.T)
    # b1_ref   : (1, C)        f32
    # w2_ref   : (C, C)        bf16
    # b2_ref   : (1, C)        f32
    # out_ref  : (TB, C)
    t = t_ref[...]                         # (TB, 1)
    freqs = trig_ref[0:1, :]               # (1, C//4)
    phase = trig_ref[1:2, :]               # (1, C//4)

    # One fused angle array: [t*f_0..t*f_{h-1}, t*f_0+pi/2, ...] -> sin gives [sin, cos].
    angles = t * freqs + phase             # (TB, C//4)
    emb = jnp.sin(angles)                  # single EUP sin over one lane-fuller vreg

    # lin1: single dot against the full W1 (bf16 operands, f32 accumulation).
    h = (jnp.dot(emb.astype(jnp.bfloat16), w1_ref[...],
                 preferred_element_type=jnp.float32)
         + b1_ref[...])                    # (TB, C) f32

    # Swish: x * sigmoid(x), reciprocal on the EUP.
    h = h * pl.reciprocal(1.0 + jnp.exp(-h), approx=True)

    # lin2
    out = (jnp.dot(h.astype(jnp.bfloat16), w2_ref[...],
                   preferred_element_type=jnp.float32)
           + b2_ref[...])                  # (TB, C) f32

    out_ref[...] = out.astype(out_ref.dtype)


def time_embedding(t, w1, b1, w2, b2, *, out_dtype=jnp.float32):
    """DDPM TimeEmbedding forward.

    t : (B,) timesteps;  w1: (C//4, C);  b1: (C,);  w2: (C, C);  b2: (C,).
    Weights are stored as (in_features, out_features) == PyTorch weight.T.
    Returns (B, C) in `out_dtype`.
    """
    B = t.shape[0]
    in_dim, C = w1.shape
    assert C % 8 == 0 and C >= 16, "n_channels must be a multiple of 8 and >= 16"
    assert in_dim == C // 4 and w2.shape == (C, C)
    half_dim = C // 8

    # --- compile-time constant trig table (hoisted out of the kernel) ---------
    scale = math.log(10000.0) / (half_dim - 1)
    freqs = jnp.exp(jnp.arange(half_dim, dtype=jnp.float32) * -scale)     # (half,)
    freqs_full = jnp.concatenate([freqs, freqs])                          # (C//4,)
    phase = jnp.concatenate([jnp.zeros((half_dim,), jnp.float32),
                             jnp.full((half_dim,), jnp.float32(math.pi / 2))])
    trig = jnp.stack([freqs_full, phase], axis=0)                         # (2, C//4)

    # --- batch tiling: pad rows to a multiple of 8, tile of up to 128 rows ----
    TB = min(128, ((B + 7) // 8) * 8)
    B_pad = ((B + TB - 1) // TB) * TB
    t2d = jnp.zeros((B_pad, 1), jnp.float32).at[:B, 0].set(t.astype(jnp.float32))

    # Weights to bf16 (ideally they live in HBM as bf16 already); biases stay f32.
    w1_b = w1.astype(jnp.bfloat16)
    w2_b = w2.astype(jnp.bfloat16)
    b1_2d = b1.reshape(1, C).astype(jnp.float32)
    b2_2d = b2.reshape(1, C).astype(jnp.float32)

    out_size = jnp.dtype(out_dtype).itemsize
    cost = pl.CostEstimate(
        flops=2 * B_pad * (in_dim * C + C * C),
        transcendentals=B_pad * (in_dim + 2 * C),          # sin + exp + vrcp
        bytes_accessed=(in_dim * C + C * C) * 2             # bf16 weights
                        + 2 * C * 4                          # biases
                        + B_pad * 4                          # t
                        + B_pad * C * out_size,              # output
    )

    out = pl.pallas_call(
        _time_embedding_kernel,
        out_shape=jax.ShapeDtypeStruct((B_pad, C), out_dtype),
        grid=(B_pad // TB,),
        in_specs=[
            pl.BlockSpec((TB, 1), lambda i: (i, 0)),         # timesteps: tiled over rows
            pl.BlockSpec((2, in_dim), lambda i: (0, 0)),     # trig table: resident
            pl.BlockSpec((in_dim, C), lambda i: (0, 0)),     # w1: resident
            pl.BlockSpec((1, C), lambda i: (0, 0)),          # b1
            pl.BlockSpec((C, C), lambda i: (0, 0)),          # w2: resident
            pl.BlockSpec((1, C), lambda i: (0, 0)),          # b2
        ],
        out_specs=pl.BlockSpec((TB, C), lambda i: (i, 0)),
        compiler_params=pltpu.CompilerParams(
            dimension_semantics=("parallel",)),              # rows shard across v7x TCs
        cost_estimate=cost,
    )(t2d, trig, w1_b, b1_2d, w2_b, b2_2d)

    return out[:B]


def _init_linear(key, fan_in, fan_out):
    # PyTorch nn.Linear default init: U(-1/sqrt(fan_in), 1/sqrt(fan_in))
    kw, kb = jax.random.split(key)
    bound = 1.0 / math.sqrt(fan_in)
    # stored as (in, out) == PyTorch weight.T
    w = jax.random.uniform(kw, (fan_in, fan_out), jnp.float32, -bound, bound)
    b = jax.random.uniform(kb, (fan_out,), jnp.float32, -bound, bound)
    return w, b


if __name__ == "__main__":
    key = jax.random.PRNGKey(0)
    k_t, k_l1, k_l2 = jax.random.split(key, 3)

    n_channels = 128            # lin1: 32 -> 128, lin2: 128 -> 128
    batch = 8

    # Timesteps (like DDPM: integer steps cast to float)
    t = jax.random.randint(k_t, (batch,), 0, 1000).astype(jnp.float32)

    w1, b1 = _init_linear(k_l1, n_channels // 4, n_channels)
    w2, b2 = _init_linear(k_l2, n_channels, n_channels)

    out = time_embedding(t, w1, b1, w2, b2)
    jax.block_until_ready(out)

    # ---- references ---------------------------------------------------------
    half_dim = n_channels // 8
    scale = math.log(10000.0) / (half_dim - 1)
    freqs = jnp.exp(jnp.arange(half_dim, dtype=jnp.float32) * -scale)
    emb = t[:, None] * freqs[None, :]
    emb = jnp.concatenate([jnp.sin(emb), jnp.cos(emb)], axis=1)

    # (a) bf16-matched reference (same rounding as the kernel): tight tolerance.
    w1b = w1.astype(jnp.bfloat16).astype(jnp.float32)
    w2b = w2.astype(jnp.bfloat16).astype(jnp.float32)
    emb_b = emb.astype(jnp.bfloat16).astype(jnp.float32)
    h = emb_b @ w1b + b1
    h = h * jax.nn.sigmoid(h)
    ref_bf16 = h.astype(jnp.bfloat16).astype(jnp.float32) @ w2b + b2
    assert jnp.allclose(out, ref_bf16, atol=1e-2, rtol=1e-2), "mismatch vs bf16 reference"

    # (b) full-f32 reference (module semantics): loose tolerance for bf16 weights.
    h32 = emb @ w1 + b1
    h32 = h32 * jax.nn.sigmoid(h32)
    ref_f32 = h32 @ w2 + b2
    assert jnp.allclose(out, ref_f32, atol=5e-2, rtol=5e-2), "mismatch vs f32 reference"

    print("KERNEL_OK")
</pallas_src>

<mosaic_0001>
module attributes {stable_mosaic.version = 11 : i64} {
  func.func @_time_embedding_kernel(%arg0: i32, %arg1: memref<8x1xf32, #tpu.memory_space<vmem>>, %arg2: memref<2x32xf32, #tpu.memory_space<vmem>>, %arg3: memref<32x128xbf16, #tpu.memory_space<vmem>>, %arg4: memref<1x128xf32, #tpu.memory_space<vmem>>, %arg5: memref<128x128xbf16, #tpu.memory_space<vmem>>, %arg6: memref<1x128xf32, #tpu.memory_space<vmem>>, %arg7: memref<8x128xf32, #tpu.memory_space<vmem>>) attributes {dimension_semantics = [#tpu.dimension_semantics<parallel>], iteration_bounds = array<i64: 1>, scalar_prefetch = 0 : i64, scratch_operands = 0 : i64, tpu.core_type = #tpu.core_type<tc>, window_params = [{transform_indices = @transform_0, window_bounds = array<i64: 8, 1>}, {pipeline_mode = #tpu.pipeline_mode<synchronous>, transform_indices = @transform_1, window_bounds = array<i64: 2, 32>}, {pipeline_mode = #tpu.pipeline_mode<synchronous>, transform_indices = @transform_2, window_bounds = array<i64: 32, 128>}, {pipeline_mode = #tpu.pipeline_mode<synchronous>, transform_indices = @transform_3, window_bounds = array<i64: 1, 128>}, {pipeline_mode = #tpu.pipeline_mode<synchronous>, transform_indices = @transform_4, window_bounds = array<i64: 128, 128>}, {pipeline_mode = #tpu.pipeline_mode<synchronous>, transform_indices = @transform_5, window_bounds = array<i64: 1, 128>}, {transform_indices = @transform_6, window_bounds = array<i64: 8, 128>}]} {
    %c0 = arith.constant 0 : index
    %c0_0 = arith.constant 0 : index
    %0 = vector.load %arg1[%c0, %c0_0] : memref<8x1xf32, #tpu.memory_space<vmem>>, vector<8x1xf32>
    %c0_1 = arith.constant 0 : index
    %c0_2 = arith.constant 0 : index
    %1 = vector.load %arg2[%c0_1, %c0_2] : memref<2x32xf32, #tpu.memory_space<vmem>>, vector<1x32xf32>
    %c1 = arith.constant 1 : index
    %c0_3 = arith.constant 0 : index
    %2 = vector.load %arg2[%c1, %c0_3] : memref<2x32xf32, #tpu.memory_space<vmem>>, vector<1x32xf32>
    %3 = vector.broadcast %0 : vector<8x1xf32> to vector<8x32xf32>
    %4 = vector.broadcast %1 : vector<1x32xf32> to vector<8x32xf32>
    %5 = arith.mulf %3, %4 : vector<8x32xf32>
    %6 = vector.broadcast %2 : vector<1x32xf32> to vector<8x32xf32>
    %7 = arith.addf %5, %6 : vector<8x32xf32>
    %8 = math.sin %7 : vector<8x32xf32>
    %9 = arith.truncf %8 : vector<8x32xf32> to vector<8x32xbf16>
    %c0_4 = arith.constant 0 : index
    %c0_5 = arith.constant 0 : index
    %10 = vector.load %arg3[%c0_4, %c0_5] : memref<32x128xbf16, #tpu.memory_space<vmem>>, vector<32x128xbf16>
    %cst = arith.constant dense<0.000000e+00> : vector<8x128xf32>
    %11 = tpu.matmul %9, %10, %cst {dimension_numbers = #tpu.dot_dimension_numbers<[1], [0], [0], [1], [0, 0, 1, 1], [], []>} : vector<8x32xbf16>, vector<32x128xbf16>, vector<8x128xf32> -> vector<8x128xf32>
    %c0_6 = arith.constant 0 : index
    %c0_7 = arith.constant 0 : index
    %12 = vector.load %arg4[%c0_6, %c0_7] : memref<1x128xf32, #tpu.memory_space<vmem>>, vector<1x128xf32>
    %13 = vector.broadcast %12 : vector<1x128xf32> to vector<8x128xf32>
    %14 = arith.addf %11, %13 : vector<8x128xf32>
    %cst_8 = arith.constant 0.000000e+00 : f32
    %15 = vector.broadcast %cst_8 : f32 to vector<8x128xf32>
    %16 = arith.subf %15, %14 : vector<8x128xf32>
    %17 = math.exp %16 : vector<8x128xf32>
    %cst_9 = arith.constant 1.000000e+00 : f32
    %18 = vector.broadcast %cst_9 : f32 to vector<8x128xf32>
    %19 = arith.addf %18, %17 : vector<8x128xf32>
    %20 = tpu.reciprocal %19 {approx = true} : vector<8x128xf32> -> vector<8x128xf32>
    %21 = arith.mulf %14, %20 : vector<8x128xf32>
    %22 = arith.truncf %21 : vector<8x128xf32> to vector<8x128xbf16>
    %c0_10 = arith.constant 0 : index
    %c0_11 = arith.constant 0 : index
    %23 = vector.load %arg5[%c0_10, %c0_11] : memref<128x128xbf16, #tpu.memory_space<vmem>>, vector<128x128xbf16>
    %cst_12 = arith.constant dense<0.000000e+00> : vector<8x128xf32>
    %24 = tpu.matmul %22, %23, %cst_12 {dimension_numbers = #tpu.dot_dimension_numbers<[1], [0], [0], [1], [0, 0, 1, 1], [], []>} : vector<8x128xbf16>, vector<128x128xbf16>, vector<8x128xf32> -> vector<8x128xf32>
    %c0_13 = arith.constant 0 : index
    %c0_14 = arith.constant 0 : index
    %25 = vector.load %arg6[%c0_13, %c0_14] : memref<1x128xf32, #tpu.memory_space<vmem>>, vector<1x128xf32>
    %26 = vector.broadcast %25 : vector<1x128xf32> to vector<8x128xf32>
    %27 = arith.addf %24, %26 : vector<8x128xf32>
    %c0_15 = arith.constant 0 : index
    %c0_16 = arith.constant 0 : index
    %28 = vector.load %arg7[%c0_15, %c0_16] : memref<8x128xf32, #tpu.memory_space<vmem>>, vector<8x128xf32>
    tpu.vector_store %arg7[%c0_15, %c0_16], %27 {strides = array<i32>} : memref<8x128xf32, #tpu.memory_space<vmem>>, vector<8x128xf32>,
    return
  }
  func.func @transform_0(%arg0: i32) -> (i32, i32) {
    %c0_i32 = arith.constant 0 : i32
    %c0_i32_0 = arith.constant 0 : i32
    return %arg0, %c0_i32 : i32, i32
  }
  func.func @transform_1(%arg0: i32) -> (i32, i32) {
    %c0_i32 = arith.constant 0 : i32
    %c0_i32_0 = arith.constant 0 : i32
    %c0_i32_1 = arith.constant 0 : i32
    return %c0_i32, %c0_i32_0 : i32, i32
  }
  func.func @transform_2(%arg0: i32) -> (i32, i32) {
    %c0_i32 = arith.constant 0 : i32
    %c0_i32_0 = arith.constant 0 : i32
    %c0_i32_1 = arith.constant 0 : i32
    return %c0_i32, %c0_i32_0 : i32, i32
  }
  func.func @transform_3(%arg0: i32) -> (i32, i32) {
    %c0_i32 = arith.constant 0 : i32
    %c0_i32_0 = arith.constant 0 : i32
    %c0_i32_1 = arith.constant 0 : i32
    return %c0_i32, %c0_i32_0 : i32, i32
  }
  func.func @transform_4(%arg0: i32) -> (i32, i32) {
    %c0_i32 = arith.constant 0 : i32
    %c0_i32_0 = arith.constant 0 : i32
    %c0_i32_1 = arith.constant 0 : i32
    return %c0_i32, %c0_i32_0 : i32, i32
  }
  func.func @transform_5(%arg0: i32) -> (i32, i32) {
    %c0_i32 = arith.constant 0 : i32
    %c0_i32_0 = arith.constant 0 : i32
    %c0_i32_1 = arith.constant 0 : i32
    return %c0_i32, %c0_i32_0 : i32, i32
  }
  func.func @transform_6(%arg0: i32) -> (i32, i32) {
    %c0_i32 = arith.constant 0 : i32
    %c0_i32_0 = arith.constant 0 : i32
    return %arg0, %c0_i32 : i32, i32
  }
}

</mosaic_0001>

<bundles_post_ra>
// kernel: tpu_custom_call.1
= control target key start
LH: loop header
LB: loop body
LE: loop exit
PB: predicated region body
PF: predicated region fallthrough
CT: control target
= control target key end

     0   :  { %11 = vsyncpa [#allocation3], 0  ;;  %s654_s0 = inlined_call_operand.vmem [shape: f32[8,1], index: 0, kind: input, shape index: {}]   ;;  %s655_s1 = inlined_call_operand.vmem [shape: f32[2,32], index: 1, kind: input, shape index: {}]   ;;  %s656_s2 = inlined_call_operand.hbm [shape: bf16[32,128], index: 2, kind: input, shape index: {}]   ;;  %s657_s3 = inlined_call_operand.vmem [shape: f32[1,128], index: 3, kind: input, shape index: {}]   ;;  %s658_s4 = inlined_call_operand.hbm [shape: bf16[128,128], index: 4, kind: input, shape index: {}]   ;;  %s659_s5 = inlined_call_operand.vmem [shape: f32[1,128], index: 5, kind: input, shape index: {}]   ;;  %s660_s6 = inlined_call_operand.hbm [shape: f32[8,128], index: 6, kind: output, shape index: {}]  }
   0x1   :  { %12 = vsyncpa [#allocation6], 0 }
   0x2   :  { %13 = vsyncpa [#allocation4], 0  ;;  %s22_s23 = sshll.u32 %s656_s2, 4  ;;  %s522_s24 = smov [#allocation2]   ;;  %s23_s23 = int_to_ptr.hbm [resolvable:$true] %s22_s23 }
   0x3   :  { %s24_s25 = sshll.u32 %s522_s24, 4  ;;  %s37_s28 = sshll.u32 %s658_s4, 4  ;;  %s25_s25 = int_to_ptr.vmem [resolvable:$true] %s24_s25  ;;  %s38_s28 = int_to_ptr.hbm [resolvable:$true] %s37_s28 }
   0x4   :  { %s523_s29 = smov 64   ;;  %s524_s30 = smov 4  }
   0x5   :  { %30 = dma.hbm_to_vmem [thread:$0]  %s23_s23, 256, %s25_s25, [#allocation3], %s523_s29, %s523_s29, %s524_s30  }
   0x6   :  { %s525_s7 = smov [#allocation5]  }
   0x7   :  { %s39_s8 = sshll.u32 %s525_s7, 4  ;;  %s40_s8 = int_to_ptr.vmem [resolvable:$true] %s39_s8 }
   0x8   :  { %45 = dma.hbm_to_vmem [thread:$0]  %s38_s28, 1024, %s40_s8, [#allocation6], %s523_s29, %s523_s29, %s524_s30  }
   0x9   :  { %516 = dma.done.wait [#allocation3], 256  }
   0xa   :  { %517 = vsyncadd [#allocation3], 4294967040 }
   0xb   :  { %518 = dma.done.wait [#allocation6], 1024  }
   0xc   :  { %519 = vsyncadd [#allocation6], 4294966272  ;;  %v526_v0 = vmov 0   ;;  %v57_v1 = vld [vmem:[%s654_s0] sm:$0xff]  ;;  %v414_v6 = vld [vmem:[#allocation2 + $0x8] sm:$0xff]  ;;  %s533_s15 = smov [#allocation7]  }
   0xd   :  { %435 = vset.pattern.permute.xlu0 %v526_v0  ;;  %v436_v2 = vld [vmem:[%s655_s1] ss:$0 sm:$0xff]  ;;  %v437_v3 = vld [vmem:[%s655_s1 + $0x1] ss:$0 sm:$0xff]  ;;  %255 = vmatpush.bf16.msra.mxu0 %v414_v6  ;;  %v527_v20 = vmov 683565275  }
   0xe   :  { %62 = vperm.xlu0 %435, %v57_v1   ;;  %v413_v8 = vld [vmem:[#allocation2] sm:$0xff]  ;;  %v528_v22 = vmov 2475754826   ;;  %v529_v25 = vmov 2131351028   ;;  %s356_s16 = sshll.u32 %s533_s15, 4  ;;  %s357_s16 = int_to_ptr.vmem [resolvable:$true] %s356_s16 }
   0xf   :  { %v530_v28 = vmov 2102212464   ;;  %v531_v31 = vmov 920167782   ;;  %v532_v34 = vmov 1326507024  }
  0x10   :  { %s358_s18 = sshll.u32 %s660_s6, 4  ;;  %s359_s18 = int_to_ptr.hbm [resolvable:$true] %s358_s18 }
  0x11   :  { %256 = vmatpush.bf16.msra.mxu0 %v413_v8 }
  0x80   :  { %v63_v4 = vpop.permute.xlu0 %62 }
  0x81   :  { %v66_v5 = vmul.f32 %v436_v2, %v63_v4 }
  0x83   :  { %v585_v7 = vadd.f32 %v437_v3, %v66_v5 }
  0x85   :  { %v72_v9 = vand.u32 2139095040, %v585_v7  ;;  %v69_v12 = vand.u32 2147483647, %v585_v7  ;;  %vm71_vm12 = vcmp.lt.s32.totalorder %v585_v7, 0 }
  0x87   :  { %v73_v10 = vshrl.u32 %v72_v9, 23  ;;  %v76_v14 = vand.u32 8388607, %v69_v12  ;;  %vm70_vm13 = vcmp.le.f32.partialorder %v69_v12, 0.7853982 }
  0x89   :  { %v369_v11 = vadd.s32 4294967169, %v73_v10  ;;  %v77_v18 = vor.u32 8388608, %v76_v14 }
  0x8b   :  { %v79_v13 = vadd.s32 1, %v369_v11  ;;  %v602_v41 = vshll.u32 %v77_v18, 8 }
  0x8d   :  { %vm80_vm0 = vcmp.gt.s32.totalorder %v79_v13, 0  ;;  %v118_v50 = vand.u32 65535, %v602_v41  ;;  %v119_v55 = vshrl.u32 %v602_v41, 16 }
  0x8e   :  { %v81_v15 = vsel %vm80_vm0, %v79_v13, 0 }
  0x8f   :  { %v83_v16 = vand.u32 31, %v81_v15  ;;  %v593_v19 = vshrl.u32 %v81_v15, 5 }
  0x91   :  { %v591_v17 = vsub.s32 32, %v83_v16  ;;  %v86_v21 = vshll.u32 %v527_v20, %v83_v16  ;;  %v89_v23 = vshll.u32 %v528_v22, %v83_v16  ;;  %v92_v27 = vshll.u32 %v529_v25, %v83_v16 }
  0x92   :  { %v95_v30 = vshll.u32 %v530_v28, %v83_v16  ;;  %v98_v33 = vshll.u32 %v531_v31, %v83_v16  ;;  %vm101_vm1 = vcmp.lt.s32.totalorder %v593_v19, 1  ;;  %vm104_vm2 = vcmp.lt.s32.totalorder %v593_v19, 4 }
  0x93   :  { %v87_v24 = vshrl.u32 %v528_v22, %v591_v17  ;;  %v90_v26 = vshrl.u32 %v529_v25, %v591_v17  ;;  %v93_v29 = vshrl.u32 %v530_v28, %v591_v17  ;;  %v96_v32 = vshrl.u32 %v531_v31, %v591_v17 }
  0x94   :  { %v99_v35 = vshrl.u32 %v532_v34, %v591_v17  ;;  %vm103_vm3 = vcmp.lt.s32.totalorder %v593_v19, 3  ;;  %vm102_vm4 = vcmp.lt.s32.totalorder %v593_v19, 2  ;;  %v85_v14 = vshrl.u32 %v527_v20, %v591_v17 }
  0x95   :  { %v88_v36 = vor.u32 %v87_v24, %v86_v21  ;;  %v91_v37 = vor.u32 %v90_v26, %v89_v23  ;;  %v94_v38 = vor.u32 %v93_v29, %v92_v27  ;;  %v97_v39 = vor.u32 %v96_v32, %v95_v30 }
  0x96   :  { %v100_v40 = vor.u32 %v99_v35, %v98_v33 }
  0x97   :  { %v109_v42 = vsel %vm101_vm1, %v88_v36, %v91_v37  ;;  %v113_v43 = vsel %vm101_vm1, %v91_v37, %v94_v38  ;;  %v110_v44 = vsel %vm104_vm2, %v97_v39, 920167782  ;;  %v106_v8 = vsel %vm104_vm2, %v94_v38, 2102212464 }
  0x98   :  { %v114_v45 = vsel %vm104_vm2, %v100_v40, 1326507024  ;;  %v111_v46 = vsel %vm103_vm3, %v94_v38, %v110_v44  ;;  %v105_v24 = vsel %vm101_vm1, %v85_v14, %v88_v36  ;;  %v107_v25 = vsel %vm103_vm3, %v91_v37, %v106_v8 }
  0x99   :  { %v115_v47 = vsel %vm103_vm3, %v97_v39, %v114_v45  ;;  %v112_v48 = vsel %vm102_vm4, %v109_v42, %v111_v46  ;;  %v108_v17 = vsel %vm102_vm4, %v105_v24, %v107_v25  ;;  %vm212_vm1 = vweird.f32 %v585_v7 }
  0x9a   :  { %v116_v49 = vsel %vm102_vm4, %v113_v43, %v115_v47  ;;  %v142_v53 = vand.u32 65535, %v112_v48  ;;  %v143_v54 = vshrl.u32 %v112_v48, 16  ;;  %v162_v32 = vmul.u32 %v602_v41, %v108_v17  ;;  %v417_v17 = vld [vmem:[#allocation5 + $0x10] sm:$0xff] }
  0x9b   :  { %v120_v51 = vand.u32 65535, %v116_v49  ;;  %v121_v52 = vshrl.u32 %v116_v49, 16  ;;  %vm245_vm2 = vcmask 261120  }
  0x9c   :  { %v145_v57 = vmul.u32 %v143_v54, %v118_v50  ;;  %v146_v59 = vmul.u32 %v142_v53, %v119_v55  ;;  %v144_v62 = vmul.u32 %v142_v53, %v118_v50  ;;  %v147_v2 = vmul.u32 %v143_v54, %v119_v55 }
  0x9d   :  { %v123_v56 = vmul.u32 %v121_v52, %v118_v50  ;;  %v124_v58 = vmul.u32 %v120_v51, %v119_v55  ;;  %v122_v60 = vmul.u32 %v120_v51, %v118_v50  ;;  %v125_v1 = vmul.u32 %v121_v52, %v119_v55  ;;  %v422_v52 = vld [vmem:[#allocation5 + $0x38] sm:$0xff] }
  0x9e   :  { %v148_v63 = vshll.u32 %v145_v57, 16  ;;  %v150_v4 = vshll.u32 %v146_v59, 16  ;;  %v149_v22 = vshrl.u32 %v145_v57, 16  ;;  %v151_v28 = vshrl.u32 %v146_v59, 16  ;;  %337 = vmatpush.bf16.msra.mxu1 %v422_v52 }
  0x9f   :  { %v126_v61 = vshll.u32 %v123_v56, 16  ;;  %v128_v3 = vshll.u32 %v124_v58, 16  ;;  %v127_v18 = vshrl.u32 %v123_v56, 16  ;;  %v129_v26 = vshrl.u32 %v124_v58, 16 }
  0xa0   :  { %vm152_vm6 = vc.u32 %v144_v62, %v148_v63  ;;  %v154_v6 = vadd.s32 %v148_v63, %v144_v62 }
  0xa1   :  { %vm130_vm5 = vc.u32 %v122_v60, %v126_v61  ;;  %v132_v5 = vadd.s32 %v126_v61, %v122_v60  ;;  %v153_v10 = vsel %vm152_vm6, 1, %v526_v0 }
  0xa2   :  { %v131_v9 = vsel %vm130_vm5, 1, %v526_v0  ;;  %v155_v13 = vadd.s32 %v153_v10, %v147_v2  ;;  %vm156_vm8 = vc.u32 %v154_v6, %v150_v4  ;;  %v158_v30 = vadd.s32 %v154_v6, %v150_v4 }
  0xa3   :  { %v133_v11 = vadd.s32 %v131_v9, %v125_v1  ;;  %vm134_vm7 = vc.u32 %v132_v5, %v128_v3  ;;  %v157_v16 = vsel %vm156_vm8, 1, %v526_v0 }
  0xa4   :  { %v135_v15 = vsel %vm134_vm7, 1, %v526_v0  ;;  %v159_v23 = vadd.s32 %v157_v16, %v155_v13 }
  0xa5   :  { %v137_v21 = vadd.s32 %v135_v15, %v133_v11 }
  0xa6   :  { %v160_v29 = vadd.s32 %v159_v23, %v149_v22 }
  0xa7   :  { %v138_v27 = vadd.s32 %v137_v21, %v127_v18 }
  0xa8   :  { %v161_v0 = vadd.s32 %v160_v29, %v151_v28  ;;  %v419_v28 = vld [vmem:[#allocation5 + $0x20] sm:$0xff]  ;;  %v418_v29 = vld [vmem:[#allocation5 + $0x18] sm:$0xff] }
  0xa9   :  { %v139_v20 = vadd.s32 %v138_v27, %v129_v26  ;;  %v421_v26 = vld [vmem:[#allocation5 + $0x30] sm:$0xff]  ;;  %v420_v27 = vld [vmem:[#allocation5 + $0x28] sm:$0xff] }
  0xaa   :  { %v165_v31 = vadd.s32 1, %v161_v0  ;;  %338 = vmatpush.bf16.msra.mxu1 %v421_v26 }
  0xab   :  { %vm164_vm9 = vc.u32 %v139_v20, %v158_v30  ;;  %v163_v44 = vadd.s32 %v158_v30, %v139_v20  ;;  %v416_v20 = vld [vmem:[#allocation5 + $0x8] sm:$0xff]  ;;  %v415_v30 = vld [vmem:[#allocation5] sm:$0xff] }
  0xac   :  { %v166_v33 = vsel %vm164_vm9, %v165_v31, %v161_v0 }
  0xad   :  { %v167_v34 = vadd.s32 %v166_v33, %v162_v32 }
  0xae   :  { %339 = vmatpush.bf16.msra.mxu1 %v420_v27 }
  0xaf   :  { %v168_v35 = vadd.s32 536870912, %v167_v34 }
  0xb1   :  { %v169_v36 = vshrl.u32 %v168_v35, 30 }
  0xb2   :  { %340 = vmatpush.bf16.msra.mxu1 %v419_v28 }
  0xb3   :  { %v170_v38 = vshll.u32 %v169_v36, 30  ;;  %v193_v58 = vsub.s32 4, %v169_v36 }
  0xb5   :  { %v171_v37 = vsub.s32 %v167_v34, %v170_v38  ;;  %v194_v63 = vsel %vm71_vm12, %v193_v58, %v169_v36 }
  0xb6   :  { %v196_v3 = vsel %vm70_vm13, 0, %v194_v63  ;;  %341 = vmatpush.bf16.msra.mxu1 %v418_v29 }
  0xb7   :  { %vm172_vm10 = vcmp.lt.s32.totalorder %v171_v37, 0  ;;  %v173_v39 = vsub.s32 0, %v171_v37  ;;  %v213_v9 = vadd.s32 3, %v196_v3 }
  0xb9   :  { %v174_v40 = vsel %vm172_vm10, %v173_v39, %v171_v37  ;;  %v214_v14 = vand.u32 3, %v213_v9 }
  0xba   :  { %v175_v42 = vclz %v174_v40  ;;  %342 = vmatpush.bf16.msra.mxu1 %v417_v17  ;;  %v439_v40 = vld [vmem:[%s659_s5] ss:$0 sm:$0xff] }
  0xbb   :  { %vm216_vm14 = vcmp.eq.s32.totalorder %v214_v14, 0  ;;  %vm219_vm15 = vcmp.eq.s32.totalorder %v214_v14, 2  ;;  %vm215_vm0 = vcmp.lt.s32.totalorder %v214_v14, 2 }
  0xbc   :  { %v370_v43 = vadd.s32 4294967294, %v175_v42 }
  0xbe   :  { %vm371_vm11 = vcmp.lt.s32.totalorder %v370_v43, 0  ;;  %343 = vmatpush.bf16.msra.mxu1 %v416_v20 }
  0xbf   :  { %v178_v19 = vsel %vm371_vm11, 0, %v370_v43 }
  0xc0   :  { %v179_v45 = vsub.s32 32, %v178_v19  ;;  %v183_v46 = vsub.s32 4294967266, %v178_v19  ;;  %v180_v47 = vshll.u32 %v171_v37, %v178_v19 }
  0xc2   :  { %v181_v48 = vshrl.u32 %v163_v44, %v179_v45  ;;  %v184_v49 = vadd.s32 127, %v183_v46  ;;  %344 = vmatpush.bf16.msra.mxu1 %v415_v30 }
  0xc4   :  { %v182_v41 = vor.u32 %v181_v48, %v180_v47  ;;  %v185_v50 = vshll.u32 %v184_v49, 23 }
  0xc6   :  { %v186_v51 = vor.u32 4788187, %v185_v50  ;;  %v189_v54 = vcvt.s32.f32 %v182_v41 }
  0xc8   :  { %v187_v53 = vand.u32 2147483647, %v186_v51 }
  0xca   :  { %v190_v55 = vmul.f32 %v189_v54, %v187_v53 }
  0xcc   :  { %v191_v56 = vxor.u32 2147483648, %v190_v55 }
  0xce   :  { %v192_v57 = vsel %vm71_vm12, %v191_v56, %v190_v55 }
  0xcf   :  { %v195_v59 = vsel %vm70_vm13, %v585_v7, %v192_v57  ;;  %v438_v7 = vld [vmem:[%s657_s3] ss:$0 sm:$0xff] }
  0xd0   :  { %v197_v60 = vmul.f32 %v195_v59, %v195_v59 }
  0xd2   :  { %v198_v61 = vmul.f32 -0.001358992, %v197_v60  ;;  %v205_v62 = vmul.f32 -0.00019511016, %v197_v60 }
  0xd4   :  { %v199_v1 = vadd.f32 0.041655596, %v198_v61  ;;  %v206_v2 = vadd.f32 0.008332121, %v205_v62 }
  0xd6   :  { %v200_v4 = vmul.f32 %v199_v1, %v197_v60  ;;  %v207_v5 = vmul.f32 %v206_v2, %v197_v60 }
  0xd8   :  { %v201_v6 = vadd.f32 -0.4999988, %v200_v4  ;;  %v208_v8 = vadd.f32 -0.16666654, %v207_v5 }
  0xda   :  { %v202_v10 = vmul.f32 %v201_v6, %v197_v60  ;;  %v209_v11 = vmul.f32 %v208_v8, %v197_v60 }
  0xdc   :  { %v203_v13 = vadd.f32 1.0, %v202_v10  ;;  %v210_v12 = vadd.f32 1.0, %v209_v11 }
  0xde   :  { %v211_v15 = vmul.f32 %v210_v12, %v195_v59  ;;  %v220_v16 = vxor.u32 2147483648, %v203_v13 }
  0xe0   :  { %v217_v18 = vxor.u32 2147483648, %v211_v15  ;;  %v221_v22 = vsel %vm219_vm15, %v220_v16, %v211_v15 }
  0xe2   :  { %v218_v21 = vsel %vm216_vm14, %v203_v13, %v217_v18 }
  0xe3   :  { %v222_v23 = vsel %vm215_vm0, %v218_v21, %v221_v22 }
  0xe4   :  { %v223_v24 = vsel %vm212_vm1, nan, %v222_v23 }
  0xe5   :  { %v224_v25 = vpack.c.bf16 %v223_v24, %v223_v24 }
  0xe7   :  { %380 = vmatmul.msk.bf16.vlgmr.msra.gmra.mxu0 %vm245_vm2, %v224_v25 }
 0x164   :  { %v258_v0 = vpop.f32.mrf.mxu0 }
 0x165   :  { %v259_v31 = vadd.f32 %v438_v7, %v258_v0 }
 0x167   :  { %v262_v32 = vsub.f32 0.0, %v259_v31 }
 0x169   :  { %v263_v33 = vmul.f32 1.442695, %v262_v32 }
 0x16b   :  { %440 = vpow2.f32 %v263_v33 }
 0x16c   :  { %v260_v34 = vpop.f32.mrf.mxu0 }
 0x171   :  { %v441_v35 = vpop.eup %440 }
 0x172   :  { %v265_v36 = vadd.f32 1.0, %v441_v35 }
 0x174   :  { %442 = vrcp.f32 %v265_v36 }
 0x17a   :  { %v443_v38 = vpop.eup %442 }
 0x17b   :  { %v267_v37 = vmul.f32 %v443_v38, %v259_v31 }
 0x17d   :  { %v268_v39 = vpack.c.bf16 %v267_v37, %v267_v37 }
 0x17f   :  { %345 = vmatmul.bf16.vlgmr.msra.gmra.mxu1 %v268_v39 }
 0x1fc   :  { %v346_v42 = vpop.f32.mrf.mxu1 }
 0x1fd   :  { %v347_v43 = vadd.f32 %v439_v40, %v346_v42 }
 0x1ff   :  { %350 = vst [vmem:[#allocation7] sm:$0xff] %v347_v43 }
 0x200   :  { %361 = dma.vmem_to_hbm [thread:$0]  %s357_s16, 128, %s359_s18, [#allocation4]  }
 0x204   :  { %v348_v19 = vpop.f32.mrf.mxu1 }
 0x205   :  { %520 = dma.done.wait [#allocation4], 128  }
 0x206   :  { %521 = vsyncadd [#allocation4], 4294967168 }
 0x207   :  { %366 = vsyncpa [#allocation3], 1 }
 0x208   :  { %367 = vsyncpa [#allocation6], 1 }
 0x209   :  { %368 = vsyncpa [#allocation4], 1 }

</bundles_post_ra>
